<compile_context>
chip_gen: v5e
topology: v5e:2x2
jax: 0.10.0
libtpu: 0.0.40
codegen_flags: <defaults>
</compile_context>

<pallas_src>
import jax
import jax.numpy as jnp
from jax.experimental import pallas as pl
from jax.experimental.pallas import tpu as pltpu

_LANE = 128
_MAX_BLOCK_ROWS = 8192            # 8192 * 128 * 4 B = 4 MiB per f32 input block
_VMEM_LIMIT = 32 * 1024 * 1024    # fits 2 inputs x 2 buffers x 4 MiB everywhere


def _sublane_multiple(dtype):
    # f32 -> 8, bf16/f16 -> 16, int8/bool/fp8 -> 32 (packed sublane layout).
    return 8 * max(1, 4 // jnp.dtype(dtype).itemsize)


def _make_kernel(block_rows, total, needs_mask):
    """Kernel accumulating [sum(s*t), sum(s), sum(t)] into a (3,8,128) output."""

    def kernel(x_ref, t_ref, acc_ref):
        @pl.when(pl.program_id(0) == 0)
        def _():
            acc_ref[...] = jnp.zeros_like(acc_ref)

        x = x_ref[...].astype(jnp.float32)
        t = t_ref[...].astype(jnp.float32)

        # Exact, numerically stable sigmoid: one EUP exp + one divide, both
        # fully hidden under the DMA stream of this memory-bound kernel.
        e = jnp.exp(-jnp.abs(x))
        s = jnp.where(x >= 0.0, 1.0, e) / (1.0 + e)

        if needs_mask:
            # Mask the ragged tail / out-of-bounds boundary rows.  Garbage
            # (even NaN/Inf) in the unread region is selected away here.
            row = jax.lax.broadcasted_iota(jnp.int32, (block_rows, _LANE), 0)
            lane = jax.lax.broadcasted_iota(jnp.int32, (block_rows, _LANE), 1)
            flat = (pl.program_id(0) * block_rows + row) * _LANE + lane
            valid = flat < total
            s = jnp.where(valid, s, 0.0)
            t = jnp.where(valid, t, 0.0)

        # vreg-shaped partial sums: plain VPU adds per step (tile-aligned
        # reshape, no copy); the cross-lane/sublane reduce happens once, in
        # the wrapper.
        acc_ref[0] += jnp.sum((s * t).reshape(-1, 8, _LANE), axis=0)
        acc_ref[1] += jnp.sum(s.reshape(-1, 8, _LANE), axis=0)
        acc_ref[2] += jnp.sum(t.reshape(-1, 8, _LANE), axis=0)

    return kernel


def focal_tversky_loss(inputs, targets, smooth=0.001, alpha=2.0, beta=5.0,
                       gamma=0.75):
    total = int(inputs.size)
    mult = max(_sublane_multiple(inputs.dtype), _sublane_multiple(targets.dtype))

    if total % (_LANE * mult) == 0:
        # Common path: a single (rows, 128) reshape, no padding copy.
        rows = total // _LANE
        x2d = inputs.reshape(rows, _LANE)
        t2d = targets.reshape(rows, _LANE)
    else:
        # TODO(synk): truly ragged sizes still pay one small jnp.pad copy; the
        # pad values are masked away inside the kernel, so any constant works.
        rows = ((pl.cdiv(total, _LANE) + mult - 1) // mult) * mult
        pad = rows * _LANE - total
        x2d = jnp.pad(inputs.reshape(-1), (0, pad)).reshape(rows, _LANE)
        t2d = jnp.pad(targets.reshape(-1), (0, pad)).reshape(rows, _LANE)

    block_rows = min(_MAX_BLOCK_ROWS, rows)
    grid = pl.cdiv(rows, block_rows)
    # Mask only when the last block can see elements past `total`.
    needs_mask = (rows * _LANE != total) or (rows % block_rows != 0)

    block_spec = pl.BlockSpec((block_rows, _LANE), lambda g: (g, 0))

    cost = pl.CostEstimate(
        flops=8 * total,
        transcendentals=total,
        bytes_accessed=total * (x2d.dtype.itemsize + t2d.dtype.itemsize)
        + 3 * 8 * _LANE * 4,
    )

    acc = pl.pallas_call(
        _make_kernel(block_rows, total, needs_mask),
        out_shape=jax.ShapeDtypeStruct((3, 8, _LANE), jnp.float32),
        grid_spec=pltpu.PrefetchScalarGridSpec(
            num_scalar_prefetch=0,
            grid=(grid,),
            in_specs=[block_spec, block_spec],
            # Output accumulator stays resident across the whole grid.
            out_specs=pl.BlockSpec((3, 8, _LANE), lambda g: (0, 0, 0)),
        ),
        compiler_params=pltpu.CompilerParams(
            dimension_semantics=("arbitrary",),   # reduction axis
            vmem_limit_bytes=_VMEM_LIMIT,
        ),
        cost_estimate=cost,
    )(x2d, t2d)

    sums = jnp.sum(acc, axis=(1, 2))
    tp = sums[0]
    fp = jnp.maximum(sums[1] - tp, 0.0)   # sum((1 - t) * s) = sum(s) - sum(s*t)
    fn = jnp.maximum(sums[2] - tp, 0.0)   # sum(t * (1 - s)) = sum(t) - sum(s*t)
    tversky = (tp + smooth) / (tp + alpha * fp + beta * fn + smooth)
    return (1.0 - tversky) ** gamma


def _reference_loss(inputs, targets, smooth=0.001, alpha=2.0, beta=5.0,
                    gamma=0.75):
    # Pure-JAX mirror of the PyTorch forward.
    s = jax.nn.sigmoid(inputs.astype(jnp.float32)).reshape(-1)
    t = targets.astype(jnp.float32).reshape(-1)
    tp = jnp.sum(s * t)
    fp = jnp.sum((1.0 - t) * s)
    fn = jnp.sum(t * (1.0 - s))
    tversky = (tp + smooth) / (tp + alpha * fp + beta * fn + smooth)
    return (1.0 - tversky) ** gamma


if __name__ == "__main__":
    key = jax.random.PRNGKey(0)
    k1, k2 = jax.random.split(key)
    N, C, H, W = 2, 4, 16, 16
    inputs = jax.random.normal(k1, (N, C, H, W), dtype=jnp.float32)
    targets = (jax.random.uniform(k2, (N, C, H, W)) > 0.5).astype(jnp.float32)

    loss = focal_tversky_loss(inputs, targets)
    jax.block_until_ready(loss)

    ref = _reference_loss(inputs, targets)
    assert jnp.abs(loss - ref) < 2e-3 * (1.0 + jnp.abs(ref)), (float(loss), float(ref))
    print("KERNEL_OK")
</pallas_src>

<mosaic_0001>
module attributes {stable_mosaic.version = 11 : i64} {
  func.func @kernel(%arg0: i32, %arg1: memref<16x128xf32, #tpu.memory_space<vmem>>, %arg2: memref<16x128xf32, #tpu.memory_space<vmem>>, %arg3: memref<3x8x128xf32, #tpu.memory_space<vmem>>) attributes {dimension_semantics = [#tpu.dimension_semantics<arbitrary>], iteration_bounds = array<i64: 1>, scalar_prefetch = 0 : i64, scratch_operands = 0 : i64, tpu.core_type = #tpu.core_type<tc>, window_params = [{transform_indices = @transform_0, window_bounds = array<i64: 16, 128>}, {transform_indices = @transform_1, window_bounds = array<i64: 16, 128>}, {pipeline_mode = #tpu.pipeline_mode<synchronous>, transform_indices = @transform_2, window_bounds = array<i64: 3, 8, 128>}]} {
    %c0_i32 = arith.constant 0 : i32
    %0 = arith.cmpi eq, %arg0, %c0_i32 : i32
    %1 = arith.extui %0 : i1 to i32
    %c0_i32_0 = arith.constant 0 : i32
    %2 = arith.cmpi ne, %1, %c0_i32_0 : i32
    scf.if %2 {
      %cst_26 = arith.constant 0.000000e+00 : f32
      %41 = vector.broadcast %cst_26 : f32 to vector<3x8x128xf32>
      %c0_27 = arith.constant 0 : index
      %c0_28 = arith.constant 0 : index
      %c0_29 = arith.constant 0 : index
      %42 = vector.load %arg3[%c0_27, %c0_28, %c0_29] : memref<3x8x128xf32, #tpu.memory_space<vmem>>, vector<3x8x128xf32>
      tpu.vector_store %arg3[%c0_27, %c0_28, %c0_29], %41 {strides = array<i32>} : memref<3x8x128xf32, #tpu.memory_space<vmem>>, vector<3x8x128xf32>,
    } else {
    }
    %c0 = arith.constant 0 : index
    %c0_1 = arith.constant 0 : index
    %3 = vector.load %arg1[%c0, %c0_1] : memref<16x128xf32, #tpu.memory_space<vmem>>, vector<16x128xf32>
    %c0_2 = arith.constant 0 : index
    %c0_3 = arith.constant 0 : index
    %4 = vector.load %arg2[%c0_2, %c0_3] : memref<16x128xf32, #tpu.memory_space<vmem>>, vector<16x128xf32>
    %5 = math.absf %3 : vector<16x128xf32>
    %cst = arith.constant 0.000000e+00 : f32
    %6 = vector.broadcast %cst : f32 to vector<16x128xf32>
    %7 = arith.subf %6, %5 : vector<16x128xf32>
    %8 = math.exp %7 : vector<16x128xf32>
    %cst_4 = arith.constant 0.000000e+00 : f32
    %9 = vector.broadcast %cst_4 : f32 to vector<16x128xf32>
    %10 = arith.cmpf oge, %3, %9 : vector<16x128xf32>
    %cst_5 = arith.constant 1.000000e+00 : f32
    %11 = vector.broadcast %cst_5 : f32 to vector<16x128xf32>
    %12 = arith.select %10, %11, %8 : vector<16x128xi1>, vector<16x128xf32>
    %cst_6 = arith.constant 1.000000e+00 : f32
    %13 = vector.broadcast %cst_6 : f32 to vector<16x128xf32>
    %14 = arith.addf %13, %8 : vector<16x128xf32>
    %15 = arith.divf %12, %14 : vector<16x128xf32>
    %c0_7 = arith.constant 0 : index
    %c0_8 = arith.constant 0 : index
    %c0_9 = arith.constant 0 : index
    %16 = vector.load %arg3[%c0_7, %c0_8, %c0_9] : memref<3x8x128xf32, #tpu.memory_space<vmem>>, vector<1x8x128xf32>
    %17 = vector.shape_cast %16 : vector<1x8x128xf32> to vector<8x128xf32>
    %18 = arith.mulf %15, %4 : vector<16x128xf32>
    %19 = vector.shape_cast %18 : vector<16x128xf32> to vector<2x8x128xf32>
    %cst_10 = arith.constant dense<0.000000e+00> : vector<8x128xf32>
    %20 = vector.multi_reduction <add>, %19, %cst_10 [0] : vector<2x8x128xf32> to vector<8x128xf32>
    %21 = arith.addf %17, %20 : vector<8x128xf32>
    %c0_11 = arith.constant 0 : index
    %c0_12 = arith.constant 0 : index
    %c0_13 = arith.constant 0 : index
    %22 = vector.load %arg3[%c0_11, %c0_12, %c0_13] : memref<3x8x128xf32, #tpu.memory_space<vmem>>, vector<1x8x128xf32>
    %23 = vector.shape_cast %22 : vector<1x8x128xf32> to vector<8x128xf32>
    %24 = vector.shape_cast %21 : vector<8x128xf32> to vector<1x8x128xf32>
    tpu.vector_store %arg3[%c0_11, %c0_12, %c0_13], %24 {strides = array<i32>} : memref<3x8x128xf32, #tpu.memory_space<vmem>>, vector<1x8x128xf32>,
    %c1 = arith.constant 1 : index
    %c0_14 = arith.constant 0 : index
    %c0_15 = arith.constant 0 : index
    %25 = vector.load %arg3[%c1, %c0_14, %c0_15] : memref<3x8x128xf32, #tpu.memory_space<vmem>>, vector<1x8x128xf32>
    %26 = vector.shape_cast %25 : vector<1x8x128xf32> to vector<8x128xf32>
    %27 = vector.shape_cast %15 : vector<16x128xf32> to vector<2x8x128xf32>
    %cst_16 = arith.constant dense<0.000000e+00> : vector<8x128xf32>
    %28 = vector.multi_reduction <add>, %27, %cst_16 [0] : vector<2x8x128xf32> to vector<8x128xf32>
    %29 = arith.addf %26, %28 : vector<8x128xf32>
    %c1_17 = arith.constant 1 : index
    %c0_18 = arith.constant 0 : index
    %c0_19 = arith.constant 0 : index
    %30 = vector.load %arg3[%c1_17, %c0_18, %c0_19] : memref<3x8x128xf32, #tpu.memory_space<vmem>>, vector<1x8x128xf32>
    %31 = vector.shape_cast %30 : vector<1x8x128xf32> to vector<8x128xf32>
    %32 = vector.shape_cast %29 : vector<8x128xf32> to vector<1x8x128xf32>
    tpu.vector_store %arg3[%c1_17, %c0_18, %c0_19], %32 {strides = array<i32>} : memref<3x8x128xf32, #tpu.memory_space<vmem>>, vector<1x8x128xf32>,
    %c2 = arith.constant 2 : index
    %c0_20 = arith.constant 0 : index
    %c0_21 = arith.constant 0 : index
    %33 = vector.load %arg3[%c2, %c0_20, %c0_21] : memref<3x8x128xf32, #tpu.memory_space<vmem>>, vector<1x8x128xf32>
    %34 = vector.shape_cast %33 : vector<1x8x128xf32> to vector<8x128xf32>
    %35 = vector.shape_cast %4 : vector<16x128xf32> to vector<2x8x128xf32>
    %cst_22 = arith.constant dense<0.000000e+00> : vector<8x128xf32>
    %36 = vector.multi_reduction <add>, %35, %cst_22 [0] : vector<2x8x128xf32> to vector<8x128xf32>
    %37 = arith.addf %34, %36 : vector<8x128xf32>
    %c2_23 = arith.constant 2 : index
    %c0_24 = arith.constant 0 : index
    %c0_25 = arith.constant 0 : index
    %38 = vector.load %arg3[%c2_23, %c0_24, %c0_25] : memref<3x8x128xf32, #tpu.memory_space<vmem>>, vector<1x8x128xf32>
    %39 = vector.shape_cast %38 : vector<1x8x128xf32> to vector<8x128xf32>
    %40 = vector.shape_cast %37 : vector<8x128xf32> to vector<1x8x128xf32>
    tpu.vector_store %arg3[%c2_23, %c0_24, %c0_25], %40 {strides = array<i32>} : memref<3x8x128xf32, #tpu.memory_space<vmem>>, vector<1x8x128xf32>,
    return
  }
  func.func @transform_0(%arg0: i32) -> (i32, i32) {
    %c0_i32 = arith.constant 0 : i32
    %c0_i32_0 = arith.constant 0 : i32
    return %arg0, %c0_i32 : i32, i32
  }
  func.func @transform_1(%arg0: i32) -> (i32, i32) {
    %c0_i32 = arith.constant 0 : i32
    %c0_i32_0 = arith.constant 0 : i32
    return %arg0, %c0_i32 : i32, i32
  }
  func.func @transform_2(%arg0: i32) -> (i32, i32, i32) {
    %c0_i32 = arith.constant 0 : i32
    %c0_i32_0 = arith.constant 0 : i32
    %c0_i32_1 = arith.constant 0 : i32
    %c0_i32_2 = arith.constant 0 : i32
    return %c0_i32, %c0_i32_0, %c0_i32_1 : i32, i32, i32
  }
}

</mosaic_0001>

<bundles_post_ra>
// kernel: tpu_custom_call.1
= control target key start
LH: loop header
LB: loop body
LE: loop exit
PB: predicated region body
PF: predicated region fallthrough
CT: control target
= control target key end

     0   :  { %7 = vsyncpa [#allocation3], 0  ;;  %s265_s0 = inlined_call_operand.hbm [shape: f32[16,128], index: 0, kind: input, shape index: {}]   ;;  %s266_s1 = inlined_call_operand.hbm [shape: f32[16,128], index: 1, kind: input, shape index: {}]   ;;  %s267_s2 = inlined_call_operand.hbm [shape: f32[3,8,128], index: 2, kind: output, shape index: {}]  }
   0x1   :  { %8 = vsyncpa [#allocation6], 0 }
   0x2   :  { %9 = vsyncpa [#allocation4], 0  ;;  %s14_s11 = sshll.u32 %s265_s0, 4  ;;  %s227_s12 = smov [#allocation2]   ;;  %s15_s11 = int_to_ptr.hbm [resolvable:$true] %s14_s11 }
   0x3   :  { %s16_s13 = sshll.u32 %s227_s12, 4  ;;  %s27_s16 = sshll.u32 %s266_s1, 4  ;;  %s17_s13 = int_to_ptr.vmem [resolvable:$true] %s16_s13  ;;  %s28_s16 = int_to_ptr.hbm [resolvable:$true] %s27_s16 }
   0x4   :  { %s228_s17 = smov 128   ;;  %s229_s18 = smov 8  }
   0x5   :  { %22 = dma.hbm_to_vmem [thread:$0]  %s15_s11, 256, %s17_s13, [#allocation3], %s228_s17, %s228_s17, %s229_s18  }
   0x6   :  { %s230_s19 = smov [#allocation5]  }
   0x7   :  { %s29_s20 = sshll.u32 %s230_s19, 4  ;;  %s30_s20 = int_to_ptr.vmem [resolvable:$true] %s29_s20 }
   0x8   :  { %35 = dma.hbm_to_vmem [thread:$0]  %s28_s16, 256, %s30_s20, [#allocation6], %s228_s17, %s228_s17, %s229_s18  }
   0x9   :  { %221 = dma.done.wait [#allocation3], 256  }
   0xa   :  { %222 = vsyncadd [#allocation3], 4294967040 }
   0xb   :  { %223 = dma.done.wait [#allocation6], 256  }
   0xc   :  { %224 = vsyncadd [#allocation6], 4294967040  ;;  %v51_v0 = vld [vmem:[#allocation2] sm:$0xff]  ;;  %v52_v1 = vld [vmem:[#allocation2 + $0x8] sm:$0xff]  ;;  %s231_s0 = smov [#allocation7]   ;;  %s121_s23 = sshll.u32 %s267_s2, 4  ;;  %s122_s23 = int_to_ptr.hbm [resolvable:$true] %s121_s23 }
   0xd   :  { %v55_v2 = vand.u32 2147483647, %v51_v0  ;;  %v56_v3 = vand.u32 2147483647, %v52_v1  ;;  %v53_v6 = vld [vmem:[#allocation5] sm:$0xff]  ;;  %v54_v7 = vld [vmem:[#allocation5 + $0x8] sm:$0xff] }
   0xe   :  { %v112_v10 = vadd.f32 %v54_v7, %v53_v6  ;;  %vm63_vm4 = vcmp.ge.f32.partialorder %v51_v0, 0.0  ;;  %vm64_vm5 = vcmp.ge.f32.partialorder %v52_v1, 0.0  ;;  %s119_s1 = sshll.u32 %s231_s0, 4  ;;  %s120_s1 = int_to_ptr.vmem [resolvable:$true] %s119_s1 }
   0xf   :  { %v57_v4 = vsub.f32 0.0, %v55_v2  ;;  %v58_v5 = vsub.f32 0.0, %v56_v3 }
  0x10   :  { %114 = vst [vmem:[#allocation7 + $0x10] sm:$0xff] %v112_v10 }
  0x11   :  { %v59_v8 = vmul.f32 1.442695, %v57_v4  ;;  %v61_v9 = vmul.f32 1.442695, %v58_v5 }
  0x13   :  { %141 = vpow2.f32 %v59_v8 }
  0x14   :  { %143 = vpow2.f32 %v61_v9 }
  0x19   :  { %v142_v11 = vpop.eup %141 }
  0x1a   :  { %v144_v12 = vpop.eup %143  ;;  %v67_v13 = vadd.f32 1.0, %v142_v11  ;;  %v65_v30 = vsel %vm63_vm4, 1.0, %v142_v11 }
  0x1b   :  { %v68_v14 = vadd.f32 1.0, %v144_v12  ;;  %v66_v32 = vsel %vm64_vm5, 1.0, %v144_v12 }
  0x1c   :  { %145 = vrcp.f32 %v67_v13  ;;  %vm74_vm0 = vweird.f32 %v67_v13  ;;  %v80_v18 = vand.u32 2147483648, %v67_v13  ;;  %v78_v21 = vand.u32 2147483647, %v67_v13 }
  0x1d   :  { %147 = vrcp.f32 %v68_v14  ;;  %v95_v22 = vand.u32 2147483648, %v68_v14  ;;  %vm89_vm2 = vweird.f32 %v68_v14  ;;  %v93_v24 = vand.u32 2147483647, %v68_v14 }
  0x1e   :  { %v81_v26 = vor.u32 1.1754944e-38, %v80_v18  ;;  %vm79_vm7 = vcmp.eq.f32.partialorder %v78_v21, 8.507059e+37 }
  0x1f   :  { %v96_v29 = vor.u32 1.1754944e-38, %v95_v22  ;;  %vm94_vm9 = vcmp.eq.f32.partialorder %v93_v24, 8.507059e+37 }
  0x22   :  { %v146_v15 = vpop.eup %145 }
  0x23   :  { %v148_v16 = vpop.eup %147  ;;  %v70_v17 = vmul.f32 %v146_v15, %v67_v13  ;;  %vm75_vm1 = vweird.f32 %v146_v15 }
  0x24   :  { %v85_v19 = vmul.f32 %v148_v16, %v68_v14  ;;  %vm90_vm3 = vweird.f32 %v148_v16  ;;  %vm76_vm6 = vmor %vm74_vm0, %vm75_vm1 }
  0x25   :  { %v71_v20 = vsub.f32 1.0, %v70_v17  ;;  %vm91_vm8 = vmor %vm89_vm2, %vm90_vm3 }
  0x26   :  { %v86_v23 = vsub.f32 1.0, %v85_v19 }
  0x27   :  { %v72_v25 = vmul.f32 %v146_v15, %v71_v20 }
  0x28   :  { %v87_v27 = vmul.f32 %v148_v16, %v86_v23 }
  0x29   :  { %v73_v28 = vadd.f32 %v146_v15, %v72_v25 }
  0x2a   :  { %v88_v31 = vadd.f32 %v148_v16, %v87_v27 }
  0x2b   :  { %v77_v33 = vsel %vm76_vm6, %v146_v15, %v73_v28 }
  0x2c   :  { %v82_v34 = vsel %vm79_vm7, %v81_v26, %v77_v33  ;;  %v92_v35 = vsel %vm91_vm8, %v148_v16, %v88_v31 }
  0x2d   :  { %v83_v36 = vmul.f32 %v82_v34, %v65_v30  ;;  %v97_v37 = vsel %vm94_vm9, %v96_v29, %v92_v35 }
  0x2e   :  { %v98_v38 = vmul.f32 %v97_v37, %v66_v32 }
  0x2f   :  { %v100_v39 = vmul.f32 %v83_v36, %v53_v6 }
  0x30   :  { %v101_v40 = vmul.f32 %v98_v38, %v54_v7  ;;  %v107_v41 = vadd.f32 %v98_v38, %v83_v36 }
  0x32   :  { %v102_v42 = vadd.f32 %v101_v40, %v100_v39  ;;  %109 = vst [vmem:[#allocation7 + $0x8] sm:$0xff] %v107_v41 }
  0x34   :  { %104 = vst [vmem:[#allocation7] sm:$0xff] %v102_v42 }
  0x35   :  { %127 = dma.vmem_to_hbm [thread:$0]  %s120_s1, 384, %s122_s23, [#allocation4], %s228_s17, %s228_s17, %s229_s18  }
  0x36   :  { %225 = dma.done.wait [#allocation4], 384  }
  0x37   :  { %226 = vsyncadd [#allocation4], 4294966912 }
  0x38   :  { %132 = vsyncpa [#allocation3], 1 }
  0x39   :  { %133 = vsyncpa [#allocation6], 1 }
  0x3a   :  { %134 = vsyncpa [#allocation4], 1 }

</bundles_post_ra>
